<compile_context>
chip_gen: v7x
topology: tpu7x:2x2x1
jax: 0.10.0
libtpu: 0.0.40
codegen_flags: <defaults>
</compile_context>

<pallas_src>
import jax
import jax.numpy as jnp
from jax import lax
from jax.experimental import pallas as pl
from jax.experimental.pallas import tpu as pltpu

_D2_EPS = 1e-12     # matches dist.clamp(min=1e-12) (applied to squared distances)
_NRM_EPS2 = 1e-24   # matches F.normalize eps=1e-12 (applied to squared norms)
_POS_FILL = -1.0    # below any clamped d^2 (>= 1e-12): never wins the positive max
_NEG_FILL = 1e30    # above any realistic d^2; finite so no-negative rows stay finite


def _row_from_col(col, n):
    """(N,1) f32 -> (1,N) f32 without a hardware transpose (select + sublane reduce)."""
    ri = lax.broadcasted_iota(jnp.int32, (n, n), 0)
    ci = lax.broadcasted_iota(jnp.int32, (n, n), 1)
    return jnp.sum(jnp.where(ri == ci, col, 0.0), axis=0, keepdims=True)


def _make_soft_triplet_kernel(margin, normalize_feature):
    """Builds the kernel body. margin / normalize_feature are static."""
    use_ref = margin is None

    def _accumulate(e_ref, g_ref, sq_ref):
        # One (N, tk) feature chunk: Gram partial (MXU, f32 accumulate; bf16 inputs
        # stay bf16) + squared-row-norm partial (VPU square + lane reduce).
        x = e_ref[...]
        g_ref[...] += lax.dot_general(x, x, (((1,), (1,)), ((), ())),
                                      preferred_element_type=jnp.float32)
        xf = x.astype(jnp.float32)
        sq_ref[...] += jnp.sum(xf * xf, axis=1, keepdims=True)          # (N, 1)

    def _sq_dist(g, sqc, sqr):
        # Clamped SQUARED distances; normalization folded in post-hoc (algebraically
        # identical to F.normalize before the distance).  rsqrt + multiplies only.
        if normalize_feature:
            inv_c = lax.rsqrt(jnp.maximum(sqc, _NRM_EPS2))               # (N, 1)
            inv_r = lax.rsqrt(jnp.maximum(sqr, _NRM_EPS2))               # (1, N)
            g = g * (inv_c * inv_r)
            sqc = sqc * (inv_c * inv_c)
            sqr = sqr * (inv_r * inv_r)
        return jnp.maximum(sqc + sqr - 2.0 * g, _D2_EPS)

    def _finalize(lab_col_ref, lab_row_ref, loss_ref, acc1, acc2):
        g1_ref, sq1_ref = acc1
        n = g1_ref.shape[0]

        sqc1 = sq1_ref[...]
        d2 = _sq_dist(g1_ref[...], sqc1, _row_from_col(sqc1, n))         # (N, N)
        sim = lab_col_ref[...] == lab_row_ref[...]                       # (N, N) bool

        # Hard mining on squared distances (monotone in d); sqrt only the winners.
        pos = jnp.where(sim, d2, _POS_FILL)
        neg = jnp.where(sim, _NEG_FILL, d2)
        hp2 = jnp.max(pos, axis=1, keepdims=True)                        # (N, 1)
        hn2 = jnp.min(neg, axis=1, keepdims=True)                        # (N, 1)
        hard_p = jnp.sqrt(hp2)
        hard_n = jnp.sqrt(hn2)

        # log_softmax over the pair (hard_p, hard_n)
        m = jnp.maximum(hard_p, hard_n)
        lse = m + jnp.log(jnp.exp(hard_p - m) + jnp.exp(hard_n - m))
        log_ap = hard_p - lse
        log_an = hard_n - lse

        if not use_ref:
            per = -margin * log_ap - (1.0 - margin) * log_an             # (N, 1)
        else:
            # first-occurrence hard indices, then gather from the ref distances
            col_idx = lax.broadcasted_iota(jnp.int32, (n, n), 1)
            ap_idx = jnp.min(jnp.where(pos == hp2, col_idx, n), axis=1, keepdims=True)
            an_idx = jnp.min(jnp.where(neg == hn2, col_idx, n), axis=1, keepdims=True)

            g2_ref, sq2_ref = acc2
            sqc2 = sq2_ref[...]
            d2r = _sq_dist(g2_ref[...], sqc2, _row_from_col(sqc2, n))    # (N, N)
            d_ap_ref = jnp.sqrt(jnp.sum(jnp.where(col_idx == ap_idx, d2r, 0.0),
                                        axis=1, keepdims=True))
            d_an_ref = jnp.sqrt(jnp.sum(jnp.where(col_idx == an_idx, d2r, 0.0),
                                        axis=1, keepdims=True))
            mr = jnp.maximum(d_ap_ref, d_an_ref)
            e_ap = jnp.exp(d_ap_ref - mr)
            e_an = jnp.exp(d_an_ref - mr)
            denom = e_ap + e_an
            per = -((e_ap / denom) * log_ap + (e_an / denom) * log_an)   # (N, 1)

        loss_ref[...] = (jnp.sum(per, keepdims=True) / n).astype(jnp.float32)

    if use_ref:
        def kernel(e1_ref, e2_ref, lab_col_ref, lab_row_ref, loss_ref,
                   g1, sq1, g2, sq2):
            k = pl.program_id(0)

            @pl.when(k == 0)
            def _init():
                for a in (g1, sq1, g2, sq2):
                    a[...] = jnp.zeros_like(a)

            _accumulate(e1_ref, g1, sq1)
            _accumulate(e2_ref, g2, sq2)

            @pl.when(k == pl.num_programs(0) - 1)
            def _fin():
                _finalize(lab_col_ref, lab_row_ref, loss_ref, (g1, sq1), (g2, sq2))
    else:
        def kernel(e1_ref, lab_col_ref, lab_row_ref, loss_ref, g1, sq1):
            k = pl.program_id(0)

            @pl.when(k == 0)
            def _init():
                for a in (g1, sq1):
                    a[...] = jnp.zeros_like(a)

            _accumulate(e1_ref, g1, sq1)

            @pl.when(k == pl.num_programs(0) - 1)
            def _fin():
                _finalize(lab_col_ref, lab_row_ref, loss_ref, (g1, sq1), None)

    return kernel


def _plan(n, d, itemsize, n_emb, requested=None):
    """Budget-driven feature-chunk size + explicit VMEM limit.

    Per-step DMA is n_emb * N * tk * itemsize bytes; make it as large as the
    (v7x-safe) VMEM budget allows, collapsing to a single grid step for
    typical reid shapes.  Lane dim of a block must be a multiple of 128 or
    the full feature extent.
    """
    acc_bytes = n_emb * (n * n + n) * 4            # Gram + sq-norm accumulators
    fin_bytes = 8 * n * n * 4                      # live (N,N) finalize temporaries
    budget = 48 << 20                              # headroom under v7x 64 MiB physical

    if requested is not None:
        assert d % requested == 0
        assert requested % 128 == 0 or requested == d
        tk = requested
    elif d % 128 != 0:
        tk = d                                     # must take the full extent
    else:
        avail = max(budget - acc_bytes - fin_bytes, 1 << 20)
        max_tk = avail // (n_emb * 2 * n * itemsize)   # double-buffered input chunks
        if max_tk >= d:
            tk = d                                 # single grid step
        else:
            tk = min(max((max_tk // 128) * 128, 128), d)
            while d % tk != 0:                     # 128 | d here, so this terminates
                tk -= 128

    chunk_bytes = n_emb * 2 * n * tk * itemsize
    vmem_limit = acc_bytes + fin_bytes + chunk_bytes + (4 << 20)
    vmem_limit = int(min(max(vmem_limit, 32 << 20), 64 << 20))
    return tk, vmem_limit


def soft_triplet_loss(emb1, emb2, label, *, margin=None,
                      normalize_feature=False, feature_block=None):
    """JAX/Pallas equivalent of SoftTripletLoss(margin, normalize_feature)(emb1, emb2, label)."""
    n, d = emb1.shape
    use_ref = margin is None
    n_emb = 2 if use_ref else 1
    itemsize = emb1.dtype.itemsize

    lab = label.astype(jnp.int32)
    lab_col = lab.reshape(n, 1)
    lab_row = lab.reshape(1, n)

    tk, vmem_limit = _plan(n, d, itemsize, n_emb, feature_block)
    nk = d // tk

    kernel = _make_soft_triplet_kernel(margin, normalize_feature)

    if nk >= 3:
        # accumulate body is tiny (a few MXU pushes); deeper buffering hides chunk DMA
        emb_spec = pl.BlockSpec((n, tk), lambda k: (0, k), pipeline_mode=pl.Buffered(3))
    else:
        emb_spec = pl.BlockSpec((n, tk), lambda k: (0, k))
    lab_col_spec = pl.BlockSpec((n, 1), lambda k: (0, 0))
    lab_row_spec = pl.BlockSpec((1, n), lambda k: (0, 0))
    out_spec = pl.BlockSpec((1, 1), lambda k: (0, 0))

    def acc_set():
        return [pltpu.VMEM((n, n), jnp.float32),   # Gram accumulator
                pltpu.VMEM((n, 1), jnp.float32)]   # squared-row-norm accumulator

    if use_ref:
        in_specs = [emb_spec, emb_spec, lab_col_spec, lab_row_spec]
        args = (emb1, emb2, lab_col, lab_row)
        scratch_shapes = acc_set() + acc_set()
    else:
        # margin branch never touches emb2: don't ship it to the kernel at all.
        in_specs = [emb_spec, lab_col_spec, lab_row_spec]
        args = (emb1, lab_col, lab_row)
        scratch_shapes = acc_set()

    out = pl.pallas_call(
        kernel,
        out_shape=jax.ShapeDtypeStruct((1, 1), jnp.float32),
        grid_spec=pltpu.PrefetchScalarGridSpec(
            num_scalar_prefetch=0,
            grid=(nk,),
            in_specs=in_specs,
            out_specs=out_spec,
            scratch_shapes=scratch_shapes),
        compiler_params=pltpu.CompilerParams(
            dimension_semantics=("arbitrary",),
            vmem_limit_bytes=vmem_limit),
    )(*args)
    return out[0, 0]


# ---------- pure-JAX reference (mirrors the PyTorch module) ----------
def _reference_soft_triplet_loss(emb1, emb2, label, margin=None,
                                 normalize_feature=False):
    emb1 = emb1.astype(jnp.float32)
    emb2 = emb2.astype(jnp.float32)

    def normalize(x):
        nrm = jnp.sqrt(jnp.sum(x * x, axis=1, keepdims=True))
        return x / jnp.maximum(nrm, 1e-12)

    if normalize_feature:
        emb1 = normalize(emb1)
        emb2 = normalize(emb2)

    def euclidean_dist(x, y):
        xx = jnp.sum(x ** 2, axis=1, keepdims=True)
        yy = jnp.sum(y ** 2, axis=1, keepdims=True).T
        g = jnp.matmul(x, y.T, precision=jax.lax.Precision.HIGHEST)
        return jnp.sqrt(jnp.maximum(xx + yy - 2.0 * g, 1e-12))

    n = emb1.shape[0]
    mat_dist = euclidean_dist(emb1, emb1)
    mat_sim = (label[:, None] == label[None, :]).astype(jnp.float32)

    pos_masked = mat_dist - 9999999.0 * (1.0 - mat_sim)
    neg_masked = mat_dist + 9999999.0 * mat_sim
    dist_ap = jnp.max(pos_masked, axis=1)
    ap_idx = jnp.argmax(pos_masked, axis=1)
    dist_an = jnp.min(neg_masked, axis=1)
    an_idx = jnp.argmin(neg_masked, axis=1)

    triple = jax.nn.log_softmax(jnp.stack([dist_ap, dist_an], axis=1), axis=1)
    if margin is not None:
        return jnp.mean(-margin * triple[:, 0] - (1.0 - margin) * triple[:, 1])

    mat_dist_ref = euclidean_dist(emb2, emb2)
    dist_ap_ref = mat_dist_ref[jnp.arange(n), ap_idx]
    dist_an_ref = mat_dist_ref[jnp.arange(n), an_idx]
    triple_ref = jax.nn.softmax(jnp.stack([dist_ap_ref, dist_an_ref], axis=1), axis=1)
    return jnp.sum(jnp.mean(-triple_ref * triple, axis=0))


if __name__ == "__main__":
    key = jax.random.PRNGKey(0)
    k1, k2, k3, k4 = jax.random.split(key, 4)

    N, D = 8, 32  # small batch of flat embedding vectors
    emb1 = jax.random.normal(k1, (N, D), dtype=jnp.float32)
    emb2 = jax.random.normal(k2, (N, D), dtype=jnp.float32)
    label = jnp.array([0, 0, 1, 1, 2, 2, 3, 3], dtype=jnp.int32)

    # default module config: margin=None, normalize_feature=False (soft branch)
    loss = jax.block_until_ready(soft_triplet_loss(emb1, emb2, label))
    ref = _reference_soft_triplet_loss(emb1, emb2, label)
    assert jnp.allclose(loss, ref, atol=1e-3, rtol=1e-3), (loss, ref)

    # margin branch (emb2 never shipped to the kernel)
    loss_m = jax.block_until_ready(soft_triplet_loss(emb1, emb2, label, margin=0.3))
    ref_m = _reference_soft_triplet_loss(emb1, emb2, label, margin=0.3)
    assert jnp.allclose(loss_m, ref_m, atol=1e-3, rtol=1e-3), (loss_m, ref_m)

    # normalize_feature branch (rsqrt-folded normalization)
    loss_n = jax.block_until_ready(
        soft_triplet_loss(emb1, emb2, label, normalize_feature=True))
    ref_n = _reference_soft_triplet_loss(emb1, emb2, label, normalize_feature=True)
    assert jnp.allclose(loss_n, ref_n, atol=1e-3, rtol=1e-3), (loss_n, ref_n)

    # exercise the multi-step K accumulation path explicitly: D=256, tk=128 -> 2 steps
    emb1_big = jax.random.normal(k3, (N, 256), dtype=jnp.float32)
    emb2_big = jax.random.normal(k4, (N, 256), dtype=jnp.float32)
    loss_k = jax.block_until_ready(
        soft_triplet_loss(emb1_big, emb2_big, label, feature_block=128))
    ref_k = _reference_soft_triplet_loss(emb1_big, emb2_big, label)
    assert jnp.allclose(loss_k, ref_k, atol=1e-3, rtol=1e-3), (loss_k, ref_k)

    # budget-driven plan collapses the same shape to a single grid step
    loss_k1 = jax.block_until_ready(soft_triplet_loss(emb1_big, emb2_big, label))
    assert jnp.allclose(loss_k1, ref_k, atol=1e-3, rtol=1e-3), (loss_k1, ref_k)

    # bf16 embeddings stay bf16 through the MXU (f32 accumulate); smoke check
    loss_bf16 = jax.block_until_ready(
        soft_triplet_loss(emb1.astype(jnp.bfloat16),
                          emb2.astype(jnp.bfloat16), label))
    assert bool(jnp.isfinite(loss_bf16)), loss_bf16

    print("KERNEL_OK")
</pallas_src>

<mosaic_0001>
module attributes {stable_mosaic.version = 11 : i64} {
  func.func @kernel(%arg0: i32, %arg1: memref<8x32xf32, #tpu.memory_space<vmem>>, %arg2: memref<8x32xf32, #tpu.memory_space<vmem>>, %arg3: memref<8x1xi32, #tpu.memory_space<vmem>>, %arg4: memref<1x8xi32, #tpu.memory_space<vmem>>, %arg5: memref<1x1xf32, #tpu.memory_space<vmem>>, %arg6: memref<8x8xf32, #tpu.memory_space<vmem>>, %arg7: memref<8x1xf32, #tpu.memory_space<vmem>>, %arg8: memref<8x8xf32, #tpu.memory_space<vmem>>, %arg9: memref<8x1xf32, #tpu.memory_space<vmem>>) attributes {dimension_semantics = [#tpu.dimension_semantics<arbitrary>], iteration_bounds = array<i64: 1>, scalar_prefetch = 0 : i64, scratch_operands = 4 : i64, tpu.core_type = #tpu.core_type<tc>, window_params = [{transform_indices = @transform_0, window_bounds = array<i64: 8, 32>}, {transform_indices = @transform_1, window_bounds = array<i64: 8, 32>}, {pipeline_mode = #tpu.pipeline_mode<synchronous>, transform_indices = @transform_2, window_bounds = array<i64: 8, 1>}, {pipeline_mode = #tpu.pipeline_mode<synchronous>, transform_indices = @transform_3, window_bounds = array<i64: 1, 8>}, {pipeline_mode = #tpu.pipeline_mode<synchronous>, transform_indices = @transform_4, window_bounds = array<i64: 1, 1>}]} {
    %c0_i32 = arith.constant 0 : i32
    %0 = arith.cmpi eq, %arg0, %c0_i32 : i32
    %1 = arith.extui %0 : i1 to i32
    %c0_i32_0 = arith.constant 0 : i32
    %2 = arith.cmpi ne, %1, %c0_i32_0 : i32
    scf.if %2 {
      %cst_25 = arith.constant 0.000000e+00 : f32
      %28 = vector.broadcast %cst_25 : f32 to vector<8x8xf32>
      %c0_26 = arith.constant 0 : index
      %c0_27 = arith.constant 0 : index
      %29 = vector.load %arg6[%c0_26, %c0_27] : memref<8x8xf32, #tpu.memory_space<vmem>>, vector<8x8xf32>
      tpu.vector_store %arg6[%c0_26, %c0_27], %28 {strides = array<i32>} : memref<8x8xf32, #tpu.memory_space<vmem>>, vector<8x8xf32>,
      %cst_28 = arith.constant 0.000000e+00 : f32
      %30 = vector.broadcast %cst_28 : f32 to vector<8x1xf32>
      %c0_29 = arith.constant 0 : index
      %c0_30 = arith.constant 0 : index
      %31 = vector.load %arg7[%c0_29, %c0_30] : memref<8x1xf32, #tpu.memory_space<vmem>>, vector<8x1xf32>
      tpu.vector_store %arg7[%c0_29, %c0_30], %30 {strides = array<i32>} : memref<8x1xf32, #tpu.memory_space<vmem>>, vector<8x1xf32>,
      %cst_31 = arith.constant 0.000000e+00 : f32
      %32 = vector.broadcast %cst_31 : f32 to vector<8x8xf32>
      %c0_32 = arith.constant 0 : index
      %c0_33 = arith.constant 0 : index
      %33 = vector.load %arg8[%c0_32, %c0_33] : memref<8x8xf32, #tpu.memory_space<vmem>>, vector<8x8xf32>
      tpu.vector_store %arg8[%c0_32, %c0_33], %32 {strides = array<i32>} : memref<8x8xf32, #tpu.memory_space<vmem>>, vector<8x8xf32>,
      %cst_34 = arith.constant 0.000000e+00 : f32
      %34 = vector.broadcast %cst_34 : f32 to vector<8x1xf32>
      %c0_35 = arith.constant 0 : index
      %c0_36 = arith.constant 0 : index
      %35 = vector.load %arg9[%c0_35, %c0_36] : memref<8x1xf32, #tpu.memory_space<vmem>>, vector<8x1xf32>
      tpu.vector_store %arg9[%c0_35, %c0_36], %34 {strides = array<i32>} : memref<8x1xf32, #tpu.memory_space<vmem>>, vector<8x1xf32>,
    } else {
    }
    %c0 = arith.constant 0 : index
    %c0_1 = arith.constant 0 : index
    %3 = vector.load %arg1[%c0, %c0_1] : memref<8x32xf32, #tpu.memory_space<vmem>>, vector<8x32xf32>
    %c0_2 = arith.constant 0 : index
    %c0_3 = arith.constant 0 : index
    %4 = vector.load %arg6[%c0_2, %c0_3] : memref<8x8xf32, #tpu.memory_space<vmem>>, vector<8x8xf32>
    %cst = arith.constant dense<0.000000e+00> : vector<8x8xf32>
    %5 = tpu.matmul %3, %3, %cst {dimension_numbers = #tpu.dot_dimension_numbers<[1], [1], [0], [0], [0, 0, 1, 0], [], []>} : vector<8x32xf32>, vector<8x32xf32>, vector<8x8xf32> -> vector<8x8xf32>
    %6 = arith.addf %4, %5 : vector<8x8xf32>
    %c0_4 = arith.constant 0 : index
    %c0_5 = arith.constant 0 : index
    %7 = vector.load %arg6[%c0_4, %c0_5] : memref<8x8xf32, #tpu.memory_space<vmem>>, vector<8x8xf32>
    tpu.vector_store %arg6[%c0_4, %c0_5], %6 {strides = array<i32>} : memref<8x8xf32, #tpu.memory_space<vmem>>, vector<8x8xf32>,
    %c0_6 = arith.constant 0 : index
    %c0_7 = arith.constant 0 : index
    %8 = vector.load %arg7[%c0_6, %c0_7] : memref<8x1xf32, #tpu.memory_space<vmem>>, vector<8x1xf32>
    %9 = arith.mulf %3, %3 : vector<8x32xf32>
    %cst_8 = arith.constant dense<0.000000e+00> : vector<8xf32>
    %10 = vector.multi_reduction <add>, %9, %cst_8 [1] : vector<8x32xf32> to vector<8xf32>
    %11 = vector.shape_cast %10 : vector<8xf32> to vector<8x1xf32>
    %12 = arith.addf %8, %11 : vector<8x1xf32>
    %c0_9 = arith.constant 0 : index
    %c0_10 = arith.constant 0 : index
    %13 = vector.load %arg7[%c0_9, %c0_10] : memref<8x1xf32, #tpu.memory_space<vmem>>, vector<8x1xf32>
    tpu.vector_store %arg7[%c0_9, %c0_10], %12 {strides = array<i32>} : memref<8x1xf32, #tpu.memory_space<vmem>>, vector<8x1xf32>,
    %c0_11 = arith.constant 0 : index
    %c0_12 = arith.constant 0 : index
    %14 = vector.load %arg2[%c0_11, %c0_12] : memref<8x32xf32, #tpu.memory_space<vmem>>, vector<8x32xf32>
    %c0_13 = arith.constant 0 : index
    %c0_14 = arith.constant 0 : index
    %15 = vector.load %arg8[%c0_13, %c0_14] : memref<8x8xf32, #tpu.memory_space<vmem>>, vector<8x8xf32>
    %cst_15 = arith.constant dense<0.000000e+00> : vector<8x8xf32>
    %16 = tpu.matmul %14, %14, %cst_15 {dimension_numbers = #tpu.dot_dimension_numbers<[1], [1], [0], [0], [0, 0, 1, 0], [], []>} : vector<8x32xf32>, vector<8x32xf32>, vector<8x8xf32> -> vector<8x8xf32>
    %17 = arith.addf %15, %16 : vector<8x8xf32>
    %c0_16 = arith.constant 0 : index
    %c0_17 = arith.constant 0 : index
    %18 = vector.load %arg8[%c0_16, %c0_17] : memref<8x8xf32, #tpu.memory_space<vmem>>, vector<8x8xf32>
    tpu.vector_store %arg8[%c0_16, %c0_17], %17 {strides = array<i32>} : memref<8x8xf32, #tpu.memory_space<vmem>>, vector<8x8xf32>,
    %c0_18 = arith.constant 0 : index
    %c0_19 = arith.constant 0 : index
    %19 = vector.load %arg9[%c0_18, %c0_19] : memref<8x1xf32, #tpu.memory_space<vmem>>, vector<8x1xf32>
    %20 = arith.mulf %14, %14 : vector<8x32xf32>
    %cst_20 = arith.constant dense<0.000000e+00> : vector<8xf32>
    %21 = vector.multi_reduction <add>, %20, %cst_20 [1] : vector<8x32xf32> to vector<8xf32>
    %22 = vector.shape_cast %21 : vector<8xf32> to vector<8x1xf32>
    %23 = arith.addf %19, %22 : vector<8x1xf32>
    %c0_21 = arith.constant 0 : index
    %c0_22 = arith.constant 0 : index
    %24 = vector.load %arg9[%c0_21, %c0_22] : memref<8x1xf32, #tpu.memory_space<vmem>>, vector<8x1xf32>
    tpu.vector_store %arg9[%c0_21, %c0_22], %23 {strides = array<i32>} : memref<8x1xf32, #tpu.memory_space<vmem>>, vector<8x1xf32>,
    %c0_i32_23 = arith.constant 0 : i32
    %25 = arith.cmpi eq, %arg0, %c0_i32_23 : i32
    %26 = arith.extui %25 : i1 to i32
    %c0_i32_24 = arith.constant 0 : i32
    %27 = arith.cmpi ne, %26, %c0_i32_24 : i32
    scf.if %27 {
      %c0_25 = arith.constant 0 : index
      %c0_26 = arith.constant 0 : index
      %28 = vector.load %arg7[%c0_25, %c0_26] : memref<8x1xf32, #tpu.memory_space<vmem>>, vector<8x1xf32>
      %c0_27 = arith.constant 0 : index
      %c0_28 = arith.constant 0 : index
      %29 = vector.load %arg6[%c0_27, %c0_28] : memref<8x8xf32, #tpu.memory_space<vmem>>, vector<8x8xf32>
      %30 = tpu.iota {dimensions = array<i32: 0>} : vector<8x8xi32>
      %31 = tpu.iota {dimensions = array<i32: 1>} : vector<8x8xi32>
      %32 = arith.cmpi eq, %30, %31 : vector<8x8xi32>
      %cst_29 = arith.constant 0.000000e+00 : f32
      %33 = vector.shape_cast %28 : vector<8x1xf32> to vector<8x1xf32>
      %34 = vector.broadcast %33 : vector<8x1xf32> to vector<8x8xf32>
      %35 = vector.broadcast %cst_29 : f32 to vector<8x8xf32>
      %36 = arith.select %32, %34, %35 : vector<8x8xi1>, vector<8x8xf32>
      %cst_30 = arith.constant dense<0.000000e+00> : vector<8xf32>
      %37 = vector.multi_reduction <add>, %36, %cst_30 [0] : vector<8x8xf32> to vector<8xf32>
      %38 = vector.shape_cast %37 : vector<8xf32> to vector<1x8xf32>
      %39 = vector.broadcast %28 : vector<8x1xf32> to vector<8x8xf32>
      %40 = vector.broadcast %38 : vector<1x8xf32> to vector<8x8xf32>
      %41 = arith.addf %39, %40 : vector<8x8xf32>
      %cst_31 = arith.constant 2.000000e+00 : f32
      %42 = vector.broadcast %cst_31 : f32 to vector<8x8xf32>
      %43 = arith.mulf %42, %29 : vector<8x8xf32>
      %44 = arith.subf %41, %43 : vector<8x8xf32>
      %cst_32 = arith.constant 9.99999996E-13 : f32
      %45 = vector.broadcast %cst_32 : f32 to vector<8x8xf32>
      %46 = arith.maximumf %44, %45 : vector<8x8xf32>
      %c0_33 = arith.constant 0 : index
      %c0_34 = arith.constant 0 : index
      %47 = vector.load %arg3[%c0_33, %c0_34] : memref<8x1xi32, #tpu.memory_space<vmem>>, vector<8x1xi32>
      %c0_35 = arith.constant 0 : index
      %c0_36 = arith.constant 0 : index
      %48 = vector.load %arg4[%c0_35, %c0_36] : memref<1x8xi32, #tpu.memory_space<vmem>>, vector<1x8xi32>
      %49 = vector.broadcast %47 : vector<8x1xi32> to vector<8x8xi32>
      %50 = vector.broadcast %48 : vector<1x8xi32> to vector<8x8xi32>
      %51 = arith.cmpi eq, %49, %50 : vector<8x8xi32>
      %cst_37 = arith.constant -1.000000e+00 : f32
      %52 = vector.broadcast %cst_37 : f32 to vector<8x8xf32>
      %53 = arith.select %51, %46, %52 : vector<8x8xi1>, vector<8x8xf32>
      %cst_38 = arith.constant 1.000000e+30 : f32
      %54 = vector.broadcast %cst_38 : f32 to vector<8x8xf32>
      %55 = arith.select %51, %54, %46 : vector<8x8xi1>, vector<8x8xf32>
      %cst_39 = arith.constant dense<0xFF800000> : vector<8xf32>
      %56 = vector.multi_reduction <maximumf>, %53, %cst_39 [1] : vector<8x8xf32> to vector<8xf32>
      %57 = vector.shape_cast %56 : vector<8xf32> to vector<8x1xf32>
      %cst_40 = arith.constant dense<0x7F800000> : vector<8xf32>
      %58 = vector.multi_reduction <minimumf>, %55, %cst_40 [1] : vector<8x8xf32> to vector<8xf32>
      %59 = vector.shape_cast %58 : vector<8xf32> to vector<8x1xf32>
      %60 = math.sqrt %57 : vector<8x1xf32>
      %61 = math.sqrt %59 : vector<8x1xf32>
      %62 = arith.maximumf %60, %61 : vector<8x1xf32>
      %63 = arith.subf %60, %62 : vector<8x1xf32>
      %64 = math.exp %63 : vector<8x1xf32>
      %65 = arith.subf %61, %62 : vector<8x1xf32>
      %66 = math.exp %65 : vector<8x1xf32>
      %67 = arith.addf %64, %66 : vector<8x1xf32>
      %68 = math.log %67 : vector<8x1xf32>
      %69 = arith.addf %62, %68 : vector<8x1xf32>
      %70 = arith.subf %60, %69 : vector<8x1xf32>
      %71 = arith.subf %61, %69 : vector<8x1xf32>
      %72 = tpu.iota {dimensions = array<i32: 1>} : vector<8x8xi32>
      %73 = vector.broadcast %57 : vector<8x1xf32> to vector<8x8xf32>
      %74 = arith.cmpf oeq, %53, %73 : vector<8x8xf32>
      %c8_i32 = arith.constant 8 : i32
      %75 = vector.broadcast %c8_i32 : i32 to vector<8x8xi32>
      %76 = arith.select %74, %72, %75 : vector<8x8xi1>, vector<8x8xi32>
      %cst_41 = arith.constant dense<2147483647> : vector<8xi32>
      %77 = vector.multi_reduction <minsi>, %76, %cst_41 [1] : vector<8x8xi32> to vector<8xi32>
      %78 = vector.shape_cast %77 : vector<8xi32> to vector<8x1xi32>
      %79 = vector.broadcast %59 : vector<8x1xf32> to vector<8x8xf32>
      %80 = arith.cmpf oeq, %55, %79 : vector<8x8xf32>
      %c8_i32_42 = arith.constant 8 : i32
      %81 = vector.broadcast %c8_i32_42 : i32 to vector<8x8xi32>
      %82 = arith.select %80, %72, %81 : vector<8x8xi1>, vector<8x8xi32>
      %cst_43 = arith.constant dense<2147483647> : vector<8xi32>
      %83 = vector.multi_reduction <minsi>, %82, %cst_43 [1] : vector<8x8xi32> to vector<8xi32>
      %84 = vector.shape_cast %83 : vector<8xi32> to vector<8x1xi32>
      %c0_44 = arith.constant 0 : index
      %c0_45 = arith.constant 0 : index
      %85 = vector.load %arg9[%c0_44, %c0_45] : memref<8x1xf32, #tpu.memory_space<vmem>>, vector<8x1xf32>
      %c0_46 = arith.constant 0 : index
      %c0_47 = arith.constant 0 : index
      %86 = vector.load %arg8[%c0_46, %c0_47] : memref<8x8xf32, #tpu.memory_space<vmem>>, vector<8x8xf32>
      %87 = tpu.iota {dimensions = array<i32: 0>} : vector<8x8xi32>
      %88 = tpu.iota {dimensions = array<i32: 1>} : vector<8x8xi32>
      %89 = arith.cmpi eq, %87, %88 : vector<8x8xi32>
      %cst_48 = arith.constant 0.000000e+00 : f32
      %90 = vector.shape_cast %85 : vector<8x1xf32> to vector<8x1xf32>
      %91 = vector.broadcast %90 : vector<8x1xf32> to vector<8x8xf32>
      %92 = vector.broadcast %cst_48 : f32 to vector<8x8xf32>
      %93 = arith.select %89, %91, %92 : vector<8x8xi1>, vector<8x8xf32>
      %cst_49 = arith.constant dense<0.000000e+00> : vector<8xf32>
      %94 = vector.multi_reduction <add>, %93, %cst_49 [0] : vector<8x8xf32> to vector<8xf32>
      %95 = vector.shape_cast %94 : vector<8xf32> to vector<1x8xf32>
      %96 = vector.broadcast %85 : vector<8x1xf32> to vector<8x8xf32>
      %97 = vector.broadcast %95 : vector<1x8xf32> to vector<8x8xf32>
      %98 = arith.addf %96, %97 : vector<8x8xf32>
      %cst_50 = arith.constant 2.000000e+00 : f32
      %99 = vector.broadcast %cst_50 : f32 to vector<8x8xf32>
      %100 = arith.mulf %99, %86 : vector<8x8xf32>
      %101 = arith.subf %98, %100 : vector<8x8xf32>
      %cst_51 = arith.constant 9.99999996E-13 : f32
      %102 = vector.broadcast %cst_51 : f32 to vector<8x8xf32>
      %103 = arith.maximumf %101, %102 : vector<8x8xf32>
      %104 = vector.broadcast %78 : vector<8x1xi32> to vector<8x8xi32>
      %105 = arith.cmpi eq, %72, %104 : vector<8x8xi32>
      %cst_52 = arith.constant 0.000000e+00 : f32
      %106 = vector.broadcast %cst_52 : f32 to vector<8x8xf32>
      %107 = arith.select %105, %103, %106 : vector<8x8xi1>, vector<8x8xf32>
      %cst_53 = arith.constant dense<0.000000e+00> : vector<8xf32>
      %108 = vector.multi_reduction <add>, %107, %cst_53 [1] : vector<8x8xf32> to vector<8xf32>
      %109 = vector.shape_cast %108 : vector<8xf32> to vector<8x1xf32>
      %110 = math.sqrt %109 : vector<8x1xf32>
      %111 = vector.broadcast %84 : vector<8x1xi32> to vector<8x8xi32>
      %112 = arith.cmpi eq, %72, %111 : vector<8x8xi32>
      %cst_54 = arith.constant 0.000000e+00 : f32
      %113 = vector.broadcast %cst_54 : f32 to vector<8x8xf32>
      %114 = arith.select %112, %103, %113 : vector<8x8xi1>, vector<8x8xf32>
      %cst_55 = arith.constant dense<0.000000e+00> : vector<8xf32>
      %115 = vector.multi_reduction <add>, %114, %cst_55 [1] : vector<8x8xf32> to vector<8xf32>
      %116 = vector.shape_cast %115 : vector<8xf32> to vector<8x1xf32>
      %117 = math.sqrt %116 : vector<8x1xf32>
      %118 = arith.maximumf %110, %117 : vector<8x1xf32>
      %119 = arith.subf %110, %118 : vector<8x1xf32>
      %120 = math.exp %119 : vector<8x1xf32>
      %121 = arith.subf %117, %118 : vector<8x1xf32>
      %122 = math.exp %121 : vector<8x1xf32>
      %123 = arith.addf %120, %122 : vector<8x1xf32>
      %124 = arith.divf %120, %123 : vector<8x1xf32>
      %125 = arith.mulf %124, %70 : vector<8x1xf32>
      %126 = arith.divf %122, %123 : vector<8x1xf32>
      %127 = arith.mulf %126, %71 : vector<8x1xf32>
      %128 = arith.addf %125, %127 : vector<8x1xf32>
      %cst_56 = arith.constant 0.000000e+00 : f32
      %129 = vector.broadcast %cst_56 : f32 to vector<8x1xf32>
      %130 = arith.subf %129, %128 : vector<8x1xf32>
      %131 = vector.shape_cast %130 : vector<8x1xf32> to vector<1x8x1xf32>
      %cst_57 = arith.constant dense<0.000000e+00> : vector<1xf32>
      %132 = vector.multi_reduction <add>, %131, %cst_57 [1, 2] : vector<1x8x1xf32> to vector<1xf32>
      %133 = vector.shape_cast %132 : vector<1xf32> to vector<1x1x1xf32>
      %134 = vector.extract %133[0, 0, 0] : f32 from vector<1x1x1xf32>
      %135 = vector.broadcast %134 : f32 to vector<1x1xf32>
      %cst_58 = arith.constant 8.000000e+00 : f32
      %136 = vector.broadcast %cst_58 : f32 to vector<1x1xf32>
      %137 = arith.divf %135, %136 : vector<1x1xf32>
      %c0_59 = arith.constant 0 : index
      %c0_60 = arith.constant 0 : index
      %138 = vector.load %arg5[%c0_59, %c0_60] : memref<1x1xf32, #tpu.memory_space<vmem>>, vector<1x1xf32>
      tpu.vector_store %arg5[%c0_59, %c0_60], %137 {strides = array<i32>} : memref<1x1xf32, #tpu.memory_space<vmem>>, vector<1x1xf32>,
    } else {
    }
    return
  }
  func.func @transform_0(%arg0: i32) -> (i32, i32) {
    %c0_i32 = arith.constant 0 : i32
    %c0_i32_0 = arith.constant 0 : i32
    return %c0_i32, %arg0 : i32, i32
  }
  func.func @transform_1(%arg0: i32) -> (i32, i32) {
    %c0_i32 = arith.constant 0 : i32
    %c0_i32_0 = arith.constant 0 : i32
    return %c0_i32, %arg0 : i32, i32
  }
  func.func @transform_2(%arg0: i32) -> (i32, i32) {
    %c0_i32 = arith.constant 0 : i32
    %c0_i32_0 = arith.constant 0 : i32
    %c0_i32_1 = arith.constant 0 : i32
    return %c0_i32, %c0_i32_0 : i32, i32
  }
  func.func @transform_3(%arg0: i32) -> (i32, i32) {
    %c0_i32 = arith.constant 0 : i32
    %c0_i32_0 = arith.constant 0 : i32
    %c0_i32_1 = arith.constant 0 : i32
    return %c0_i32, %c0_i32_0 : i32, i32
  }
  func.func @transform_4(%arg0: i32) -> (i32, i32) {
    %c0_i32 = arith.constant 0 : i32
    %c0_i32_0 = arith.constant 0 : i32
    %c0_i32_1 = arith.constant 0 : i32
    return %c0_i32, %c0_i32_0 : i32, i32
  }
}

</mosaic_0001>

<bundles_post_ra>
// kernel: tpu_custom_call.1
= control target key start
LH: loop header
LB: loop body
LE: loop exit
PB: predicated region body
PF: predicated region fallthrough
CT: control target
= control target key end

     0   :  { %9 = vsyncpa [#allocation7], 0  ;;  %s623_s0 = inlined_call_operand.vmem [shape: f32[8,32], index: 0, kind: input, shape index: {}]   ;;  %s624_s1 = inlined_call_operand.hbm [shape: f32[8,32], index: 1, kind: input, shape index: {}]   ;;  %s625_s2 = inlined_call_operand.vmem [shape: s32[8,1], index: 2, kind: input, shape index: {}]   ;;  %s626_s3 = inlined_call_operand.vmem [shape: s32[1,8], index: 3, kind: input, shape index: {}]   ;;  %s627_s4 = inlined_call_operand.hbm [shape: f32[1,1], index: 4, kind: output, shape index: {}]  }
   0x1   :  { %10 = vsyncpa [#allocation8], 0  ;;  %s501_s15 = smov [#allocation6]   ;;  %s453_s19 = scalar_lea.hbm %s624_s1, 128 }
   0x2   :  { %s19_s16 = sshll.u32 %s501_s15, 4  ;;  %p454_p0 = scmp.ne.s32.totalorder %s624_s1, %s453_s19  ;;  %s20_s16 = int_to_ptr.vmem [resolvable:$true] %s19_s16 }
   0x3   :  { %p457_p1 = scmp.lt.u32.totalorder %s453_s19, %s624_s1 }
   0x5   :  { %p459_p2 = pnand %p457_p1, %p454_p0 }
   0x7   :  { %462 = shalt.err (!%p459_p2)
}
   0x8   :  { %s463_s24 = scalar_lea.vmem %s20_s16, 128  ;;  %p468_p4 = scmp.lt.s32.totalorder %s20_s16, %s20_s16 }
   0x9   :  { %p464_p3 = scmp.ne.s32.totalorder %s20_s16, %s463_s24  ;;  %p469_p5 = scmp.lt.s32.totalorder %s463_s24, %s463_s24 }
   0xb   :  { %p470_p6 = por %p469_p5, %p468_p4 }
   0xd   :  { %p471_p7 = pnand %p470_p6, %p464_p3 }
   0xf   :  { %474 = shalt.err (!%p471_p7)
}
  0x10   :  { %22 = dma.hbm_to_vmem [thread:$0]  %s624_s1, 128, %s20_s16, [#allocation7]  }
  0x11   :  { %497 = dma.done.wait [#allocation7], 128  }
  0x12   :  { %498 = vsyncadd [#allocation7], 4294967168  ;;  %vm36_vm0 = vcmask 7168   ;;  %v502_v0 = vmov 0.0   ;;  %vm503_vm1 = vmmov 0   ;;  %v40_v1 = vld [vmem:[%s623_s0] sm:$0xff]  ;;  %v216_v15 = vlaneseq }
  0x13   :  { %414 = vmatprep.subr.mxu0 %v502_v0  ;;  %416 = vmatprep.mubr.msk.f32.mxu0 %vm503_vm1, %v502_v0  ;;  %37 = vst.msk [vmem:[#allocation3] sm:$0xff] %vm36_vm0, %v502_v0  ;;  %39 = vst.msk [vmem:[#allocation5] sm:$0xff] %vm36_vm0, %v502_v0  ;;  %vm42_vm2 = vcmask 261120   ;;  %v120_v2 = vmul.f32 %v40_v1, %v40_v1  ;;  %v504_v4 = vmov 0   ;;  %v238_v5 = vld [vmem:[%s625_s2] sm:$0xff]  ;;  %vm34_vm3 = vcmask 64512  }
  0x14   :  { %419 = vmatprep.subr.mxu1 %v502_v0  ;;  %421 = vmatprep.mubr.msk.f32.mxu1 %vm503_vm1, %v502_v0  ;;  %35 = vst.msk [vmem:[#allocation2] sm:$0xff] %vm34_vm3, %v502_v0  ;;  %38 = vst.msk [vmem:[#allocation4] sm:$0xff] %vm34_vm3, %v502_v0  ;;  %v127_v10 = vld [vmem:[#allocation6] sm:$0xff]  ;;  %v560_v16 = vshrl.u32 %v216_v15, 7  ;;  %v562_v17 = vand.u32 127, %v216_v15 }
  0x15   :  { %415 = vmatpush3.xpose.msk.msra.mxu0 %vm42_vm2, %v40_v1  ;;  %v121_v3 = vsel %vm42_vm2, %v120_v2, 0.0  ;;  %431 = vset.pattern.permute.xlu0 %v504_v4  ;;  %v409_v30 = vld [vmem:[%s626_s3] ss:$0 sm:$0xff]  ;;  %v205_v37 = vmul.f32 %v127_v10, %v127_v10  ;;  %s505_s3 = smov [#allocation9]  }
  0x16   :  { %122 = vadd.xlane.f32.xlu0 %v121_v3  ;;  %432 = vset.pattern.permute.xlu1 %v504_v4  ;;  %vm220_vm4 = vcmp.eq.s32.totalorder %v560_v16, %v562_v17  ;;  %s396_s30 = sshll.u32 %s505_s3, 4  ;;  %s397_s30 = int_to_ptr.vmem [resolvable:$true] %s396_s30 }
  0x17   :  { %241 = vperm.xlu1 %432, %v238_v5   ;;  %420 = vmatpush3.xpose.msk.msra.mxu1 %vm42_vm2, %v127_v10  ;;  %v206_v39 = vsel %vm42_vm2, %v205_v37, 0.0  ;;  %s475_s6 = scalar_lea.vmem %s397_s30, 16  ;;  %s479_s7 = scalar_lea.vmem %s397_s30, 32 }
  0x18   :  { %417 = vmatmul.mubr.msk.f32.vlgmr.msra.gmra.mrb[0].mxu0 %vm42_vm2, %v40_v1  ;;  %p476_p8 = scmp.ne.s32.totalorder %s397_s30, %s475_s6  ;;  %p480_p9 = scmp.lt.s32.totalorder %s397_s30, %s397_s30 }
  0x19   :  { %p481_p10 = scmp.lt.s32.totalorder %s479_s7, %s475_s6 }
  0x1a   :  { %v119_v6 = vld [vmem:[#allocation3] sm:$0xff]  ;;  %422 = vmatmul.mubr.msk.f32.vlgmr.msra.gmra.mrb[0].mxu1 %vm42_vm2, %v127_v10  ;;  %v204_v47 = vld [vmem:[#allocation5] sm:$0xff] }
  0x1b   :  { %v41_v11 = vld [vmem:[#allocation2] sm:$0xff]  ;;  %v128_v5 = vld [vmem:[#allocation4] sm:$0xff]  ;;  %p482_p11 = por %p481_p10, %p480_p9 }
  0x1d   :  { %p483_p12 = pnand %p482_p11, %p476_p8 }
  0x96   :  { %v242_v31 = vpop.permute.xlu1 %241 }
  0x97   :  { %vm247_vm5 = vcmp.eq.s32.totalorder %v242_v31, %v409_v30 }
  0xa3   :  { %v123_v7 = vpop.xlane.xlu0 %122 }
  0xa4   :  { %v124_v8 = vadd.f32 %v123_v7, %v119_v6 }
  0xa6   :  { %126 = vst.msk [vmem:[#allocation3] sm:$0xff] %vm36_vm0, %v124_v8 }
  0xad   :  { %v214_v9 = vld [vmem:[#allocation3] sm:$0xff] }
  0xae   :  { %223 = vperm.xlu0 %431, %v214_v9  }
  0xeb   :  { %v112_v12 = vpop.f32.mrb[0].mxu0 }
  0xec   :  { %v116_v13 = vadd.f32 %v112_v12, %v41_v11  ;;  %v418_v14 = vpop.f32.mrb[1].mxu0 }
  0xed   :  { %v198_v6 = vpop.f32.mrb[0].mxu1 }
  0xee   :  { %118 = vst.msk [vmem:[#allocation2] sm:$0xff] %vm34_vm3, %v116_v13  ;;  %v202_v7 = vadd.f32 %v198_v6, %v128_v5  ;;  %v423_v8 = vpop.f32.mrb[1].mxu1 }
  0xf0   :  { %203 = vst.msk [vmem:[#allocation4] sm:$0xff] %vm34_vm3, %v202_v7 }
  0xf5   :  { %v215_v25 = vld [vmem:[#allocation2] sm:$0xff] }
  0xf6   :  { %v235_v28 = vmul.f32 2.0, %v215_v25 }
 0x12d   :  { %v224_v18 = vpop.permute.xlu0 %223 }
 0x12e   :  { %v226_v19 = vsel %vm220_vm4, %v224_v18, 0.0 }
 0x12f   :  { %v227_v20 = vsel %vm34_vm3, %v226_v19, 0.0 }
 0x130   :  { %v228_v21 = vrot.slane %v227_v20, 4 }
 0x132   :  { %v229_v22 = vadd.f32 %v228_v21, %v227_v20 }
 0x134   :  { %v230_v23 = vrot.slane %v229_v22, 2 }
 0x136   :  { %v231_v24 = vadd.f32 %v230_v23, %v229_v22 }
 0x138   :  { %v232_v26 = vrot.slane %v231_v24, 1 }
 0x13a   :  { %v233_v27 = vadd.f32 %v232_v26, %v231_v24 }
 0x13c   :  { %v234_v29 = vadd.f32 %v233_v27, %v224_v18 }
 0x13e   :  { %v236_v32 = vsub.f32 %v234_v29, %v235_v28 }
 0x140   :  { %v237_v33 = vmax.f32 %v236_v32, 1e-12 }
 0x142   :  { %v248_v34 = vsel %vm247_vm5, %v237_v33, -1.0  ;;  %v249_v36 = vsel %vm247_vm5, 1e+30, %v237_v33 }
 0x143   :  { %v250_v35 = vsel %vm34_vm3, %v248_v34, -inf  ;;  %v253_v38 = vsel %vm34_vm3, %v249_v36, inf }
 0x144   :  { %251 = vmax.xlane.f32.xlu1 %v250_v35 }
 0x148   :  { %254 = vmin.xlane.f32.xlu1 %v253_v38 }
 0x14c   :  { %207 = vadd.xlane.f32.xlu1 %v206_v39 }
 0x1d1   :  { %v252_v40 = vpop.xlane.xlu1 %251 }
 0x1d2   :  { %433 = vrsqrt.f32 %v252_v40  ;;  %vm283_vm6 = vcmp.eq.f32.partialorder %v248_v34, %v252_v40  ;;  %vm258_vm8 = vcmp.eq.f32.partialorder %v252_v40, inf  ;;  %v261_v58 = vand.u32 2147483648, %v252_v40 }
 0x1d3   :  { %v284_v41 = vsel %vm283_vm6, %v562_v17, 8  ;;  %vm260_vm10 = vcmp.eq.f32.partialorder %v252_v40, 0.0 }
 0x1d4   :  { %v285_v42 = vsel %vm34_vm3, %v284_v41, 2147483647 }
 0x1d5   :  { %v255_v43 = vpop.xlane.xlu1 %254  ;;  %v287_v44 = vshra.s32 %v285_v42, 16  ;;  %v286_v19 = vand.u32 65535, %v285_v42 }
 0x1d6   :  { %435 = vrsqrt.f32 %v255_v43  ;;  %vm300_vm7 = vcmp.eq.f32.partialorder %v249_v36, %v255_v43  ;;  %vm265_vm9 = vcmp.eq.f32.partialorder %v255_v43, inf  ;;  %v268_v59 = vand.u32 2147483648, %v255_v43  ;;  %v318_v36 = vld [vmem:[#allocation4] sm:$0xff] }
 0x1d7   :  { %v289_v45 = vcvt.s32.f32 %v287_v44  ;;  %v301_v46 = vsel %vm300_vm7, %v562_v17, 8  ;;  %vm267_vm11 = vcmp.eq.f32.partialorder %v255_v43, 0.0  ;;  %v288_v21 = vcvt.s32.f32 %v286_v19 }
 0x1d8   :  { %v302_v48 = vsel %vm34_vm3, %v301_v46, 2147483647  ;;  %v333_v38 = vmul.f32 2.0, %v318_v36 }
 0x1d9   :  { %290 = vmin.xlane.f32.xlu0 %v289_v45  ;;  %v304_v49 = vshra.s32 %v302_v48, 16  ;;  %v208_v50 = vpop.xlane.xlu1 %207  ;;  %v303_v22 = vand.u32 65535, %v302_v48 }
 0x1da   :  { %v209_v51 = vadd.f32 %v208_v50, %v204_v47 }
 0x1db   :  { %v306_v52 = vcvt.s32.f32 %v304_v49  ;;  %v305_v25 = vcvt.s32.f32 %v303_v22 }
 0x1dc   :  { %v434_v53 = vpop.eup %433  ;;  %210 = vst.msk [vmem:[#allocation5] sm:$0xff] %vm36_vm0, %v209_v51 }
 0x1dd   :  { %v257_v54 = vmul.f32 %v434_v53, %v252_v40  ;;  %307 = vmin.xlane.f32.xlu1 %v306_v52 }
 0x1df   :  { %v259_v57 = vsel %vm258_vm8, %v252_v40, %v257_v54 }
 0x1e0   :  { %v436_v55 = vpop.eup %435  ;;  %v581_v61 = vsel %vm260_vm10, %v261_v58, %v259_v57 }
 0x1e1   :  { %v264_v56 = vmul.f32 %v436_v55, %v255_v43 }
 0x1e3   :  { %v266_v60 = vsel %vm265_vm9, %v255_v43, %v264_v56  ;;  %v317_v4 = vld [vmem:[#allocation5] sm:$0xff] }
 0x1e4   :  { %v583_v62 = vsel %vm267_vm11, %v268_v59, %v266_v60 }
 0x1e5   :  { %v270_v63 = vmax.f32 %v581_v61, %v583_v62 }
 0x1e7   :  { %v271_v0 = vsub.f32 %v581_v61, %v270_v63  ;;  %v274_v1 = vsub.f32 %v583_v62, %v270_v63 }
 0x1e9   :  { %v272_v2 = vmul.f32 1.442695, %v271_v0  ;;  %v275_v3 = vmul.f32 1.442695, %v274_v1 }
 0x1eb   :  { %437 = vpow2.f32 %v272_v2 }
 0x1ec   :  { %439 = vpow2.f32 %v275_v3 }
 0x1ee   :  { %321 = vperm.xlu1 %432, %v317_v4  }
 0x1f5   :  { %v438_v9 = vpop.eup %437 }
 0x1f6   :  { %v440_v10 = vpop.eup %439 }
 0x1f7   :  { %v277_v11 = vadd.f32 %v440_v10, %v438_v9 }
 0x1f9   :  { %441 = vlog2.f32 %v277_v11 }
 0x203   :  { %v442_v12 = vpop.eup %441 }
 0x204   :  { %v279_v13 = vmul.f32 0.6931472, %v442_v12 }
 0x206   :  { %v590_v14 = vadd.f32 %v279_v13, %v270_v63 }
 0x208   :  { %v281_v15 = vsub.f32 %v581_v61, %v590_v14  ;;  %v282_v18 = vsub.f32 %v583_v62, %v590_v14 }
 0x266   :  { %v291_v20 = vpop.xlane.xlu0 %290 }
 0x267   :  { %vm292_vm12 = vcmp.eq.f32.partialorder %v289_v45, %v291_v20  ;;  %v297_v39 = vcvt.f32.s32 %v291_v20 }
 0x268   :  { %v293_v23 = vsel %vm292_vm12, %v288_v21, inf }
 0x269   :  { %294 = vmin.xlane.f32.xlu1 %v293_v23  ;;  %v298_v42 = vshll.u32 %v297_v39, 16 }
 0x26a   :  { %v308_v24 = vpop.xlane.xlu1 %307 }
 0x26b   :  { %vm309_vm13 = vcmp.eq.f32.partialorder %v306_v52, %v308_v24  ;;  %v314_v43 = vcvt.f32.s32 %v308_v24 }
 0x26c   :  { %v310_v26 = vsel %vm309_vm13, %v305_v25, inf }
 0x26d   :  { %311 = vmin.xlane.f32.xlu0 %v310_v26  ;;  %v315_v47 = vshll.u32 %v314_v43, 16 }
 0x26e   :  { %v322_v27 = vpop.permute.xlu1 %321 }
 0x26f   :  { %v324_v28 = vsel %vm220_vm4, %v322_v27, 0.0 }
 0x270   :  { %v325_v29 = vsel %vm34_vm3, %v324_v28, 0.0 }
 0x271   :  { %v326_v30 = vrot.slane %v325_v29, 4 }
 0x273   :  { %v327_v31 = vadd.f32 %v326_v30, %v325_v29 }
 0x275   :  { %v328_v32 = vrot.slane %v327_v31, 2 }
 0x277   :  { %v329_v33 = vadd.f32 %v328_v32, %v327_v31 }
 0x279   :  { %v330_v34 = vrot.slane %v329_v33, 1 }
 0x27b   :  { %v331_v35 = vadd.f32 %v330_v34, %v329_v33 }
 0x27d   :  { %v332_v37 = vadd.f32 %v331_v35, %v322_v27 }
 0x27f   :  { %v334_v41 = vsub.f32 %v332_v37, %v333_v38 }
 0x281   :  { %v335_v46 = vmax.f32 %v334_v41, 1e-12 }
 0x2f6   :  { %v295_v40 = vpop.xlane.xlu1 %294 }
 0x2f7   :  { %v296_v44 = vcvt.f32.s32 %v295_v40 }
 0x2f9   :  { %v299_v45 = vadd.s32 %v298_v42, %v296_v44 }
 0x2fa   :  { %v312_v16 = vpop.xlane.xlu0 %311 }
 0x2fb   :  { %v313_v48 = vcvt.f32.s32 %v312_v16  ;;  %vm336_vm14 = vcmp.eq.s32.totalorder %v562_v17, %v299_v45 }
 0x2fc   :  { %v337_v49 = vsel %vm336_vm14, %v335_v46, 0.0 }
 0x2fd   :  { %v316_v50 = vadd.s32 %v315_v47, %v313_v48  ;;  %v338_v51 = vsel %vm34_vm3, %v337_v49, 0.0 }
 0x2fe   :  { %339 = vadd.xlane.f32.xlu0 %v338_v51 }
 0x2ff   :  { %vm348_vm15 = vcmp.eq.s32.totalorder %v562_v17, %v316_v50 }
 0x300   :  { %v349_v52 = vsel %vm348_vm15, %v335_v46, 0.0 }
 0x301   :  { %v350_v53 = vsel %vm34_vm3, %v349_v52, 0.0  ;;  %vm388_vm3 = vcmask 0  }
 0x302   :  { %351 = vadd.xlane.f32.xlu0 %v350_v53 }
 0x38b   :  { %v340_v54 = vpop.xlane.xlu0 %339 }
 0x38c   :  { %443 = vrsqrt.f32 %v340_v54  ;;  %vm343_vm1 = vcmp.eq.f32.partialorder %v340_v54, inf  ;;  %v346_v63 = vand.u32 2147483648, %v340_v54  ;;  %vm345_vm4 = vcmp.eq.f32.partialorder %v340_v54, 0.0 }
 0x38f   :  { %v352_v55 = vpop.xlane.xlu0 %351 }
 0x390   :  { %445 = vrsqrt.f32 %v352_v55  ;;  %vm355_vm2 = vcmp.eq.f32.partialorder %v352_v55, inf  ;;  %v358_v0 = vand.u32 2147483648, %v352_v55  ;;  %vm357_vm5 = vcmp.eq.f32.partialorder %v352_v55, 0.0 }
 0x396   :  { %v444_v56 = vpop.eup %443 }
 0x397   :  { %v342_v57 = vmul.f32 %v444_v56, %v340_v54 }
 0x399   :  { %v344_v59 = vsel %vm343_vm1, %v340_v54, %v342_v57 }
 0x39a   :  { %v446_v58 = vpop.eup %445  ;;  %v347_v17 = vsel %vm345_vm4, %v346_v63, %v344_v59 }
 0x39b   :  { %v354_v60 = vmul.f32 %v446_v58, %v352_v55 }
 0x39d   :  { %v356_v1 = vsel %vm355_vm2, %v352_v55, %v354_v60 }
 0x39e   :  { %v359_v2 = vsel %vm357_vm5, %v358_v0, %v356_v1 }
 0x39f   :  { %v360_v3 = vmax.f32 %v347_v17, %v359_v2 }
 0x3a1   :  { %v361_v4 = vsub.f32 %v347_v17, %v360_v3  ;;  %v364_v5 = vsub.f32 %v359_v2, %v360_v3 }
 0x3a3   :  { %v362_v6 = vmul.f32 1.442695, %v361_v4  ;;  %v365_v7 = vmul.f32 1.442695, %v364_v5 }
 0x3a5   :  { %447 = vpow2.f32 %v365_v7 }
 0x3a6   :  { %449 = vpow2.f32 %v362_v6 }
 0x3af   :  { %v448_v8 = vpop.eup %447 }
 0x3b0   :  { %v450_v9 = vpop.eup %449 }
 0x3b1   :  { %v367_v10 = vadd.f32 %v450_v9, %v448_v8 }
 0x3b3   :  { %451 = vrcp.f32 %v367_v10 }
 0x3bd   :  { %v452_v11 = vpop.eup %451 }
 0x3be   :  { %v369_v12 = vmul.f32 %v452_v11, %v450_v9  ;;  %v371_v13 = vmul.f32 %v452_v11, %v448_v8 }
 0x3c0   :  { %v370_v19 = vmul.f32 %v369_v12, %v281_v15  ;;  %v372_v20 = vmul.f32 %v371_v13, %v282_v18 }
 0x3c2   :  { %v373_v21 = vadd.f32 %v372_v20, %v370_v19 }
 0x3c4   :  { %v374_v22 = vsub.f32 0.0, %v373_v21 }
 0x3c6   :  { %v375_v23 = vsel %vm36_vm0, %v374_v22, 0.0 }
 0x3c7   :  { %376 = vadd.xlane.f32.xlu0 %v375_v23 }
 0x454   :  { %v377_v24 = vpop.xlane.xlu0 %376 }
 0x455   :  { %v378_v25 = vrot.slane %v377_v24, 4 }
 0x457   :  { %v379_v26 = vadd.f32 %v378_v25, %v377_v24 }
 0x459   :  { %v380_v27 = vrot.slane %v379_v26, 2 }
 0x45b   :  { %v381_v28 = vadd.f32 %v380_v27, %v379_v26 }
 0x45d   :  { %v382_v29 = vrot.slane %v381_v28, 1 }
 0x45f   :  { %v383_v30 = vadd.f32 %v382_v29, %v381_v28 }
 0x461   :  { %424 = vpush %v383_v30 }
 0x492   :  { %s425_s5 = spop %424 }
 0x493   :  { %v385_v61 = vstv %s425_s5 }
 0x494   :  { %v387_v62 = vmul.f32 0.125, %v385_v61 }
 0x496   :  { %389 = vst.msk [vmem:[#allocation9] sm:$0x1] %vm388_vm3, %v387_v62 }
 0x497   :  { %486 = shalt.err (!%p483_p12)
}
 0x498   :  { %s487_s10 = scalar_lea.hbm %s627_s4, 16 }
 0x499   :  { %p488_p13 = scmp.ne.s32.totalorder %s627_s4, %s487_s10  ;;  %p491_p0 = scmp.lt.u32.totalorder %s487_s10, %s627_s4 }
 0x49b   :  { %p493_p1 = pnand %p491_p0, %p488_p13 }
 0x49d   :  { %496 = shalt.err (!%p493_p1)
}
 0x49e   :  { %399 = dma.vmem_to_hbm [thread:$0]  %s397_s30, 16, %s627_s4, [#allocation8]  }
 0x49f   :  { %499 = dma.done.wait [#allocation8], 16  }
 0x4a0   :  { %500 = vsyncadd [#allocation8], 4294967280 }
 0x4a1   :  { %403 = vsyncpa [#allocation7], 1 }
 0x4a2   :  { %404 = vsyncpa [#allocation8], 1 }

</bundles_post_ra>
